<compile_context>
chip_gen: v6e
topology: v6e:2x2x1
jax: 0.10.0
libtpu: 0.0.40
codegen_flags: <defaults>
</compile_context>

<pallas_src>
import functools

import jax
import jax.numpy as jnp
from jax.experimental import pallas as pl
from jax.experimental.pallas import tpu as pltpu


def _se_gate_kernel(x_ref, w1_ref, w2_ref, gate_ref, acc_ref, *, inv_hw):
    # x_ref:    (1, C, HW_TILE)  input tile for batch row b
    # w1_ref:   (C, Cr)          first FC weight, pre-transposed (pooled @ w1)
    # w2_ref:   (Cr, C)          second FC weight, pre-transposed (h @ w2)
    # gate_ref: (1, 1, C)        per-batch-row SE gate (written on the last tile)
    # acc_ref:  (1, C, HW_TILE)  f32 running partial sum (VMEM scratch)
    t = pl.program_id(1)

    @pl.when(t == 0)
    def _init():
        acc_ref[...] = jnp.zeros_like(acc_ref)

    # Streaming phase: plain VPU adds that co-issue with (and hide under) the DMA.
    acc_ref[...] += x_ref[...].astype(jnp.float32)

    @pl.when(t == pl.num_programs(1) - 1)
    def _finalize():
        # One cross-lane reduction per batch row; multiply by precomputed 1/HW.
        pooled = jnp.sum(acc_ref[...], axis=-1) * inv_hw                     # (1, C)
        # Excitation: FC -> ReLU -> FC -> Sigmoid (tiny MXU matmuls, run once).
        h = jnp.dot(pooled, w1_ref[...], preferred_element_type=jnp.float32)
        h = jnp.maximum(h, 0.0)                                              # (1, Cr)
        g = jnp.dot(h, w2_ref[...], preferred_element_type=jnp.float32)
        g = jax.nn.sigmoid(g)                                                # (1, C)
        gate_ref[...] = g[:, None, :].astype(gate_ref.dtype)                 # (1, 1, C)


def _choose_hw_tile(C, HW, itemsize, budget_bytes=2 * 1024 * 1024):
    """Pick a 128-aligned spatial (lane) tile that fits the per-buffer VMEM budget."""
    if HW <= 128:
        return HW, HW                       # single full-extent tile
    per_lane = C * itemsize
    max_lanes = max(128, (budget_bytes // per_lane) // 128 * 128)
    hw_tile = min(max_lanes, pl.cdiv(HW, 128) * 128)
    hw_padded = pl.cdiv(HW, hw_tile) * hw_tile
    return hw_tile, hw_padded


def se_layer(x, w1, w2, *, hw_tile=None):
    """x: (B, C, H, W).  w1: (C//r, C), w2: (C, C//r)  (PyTorch Linear layout, no bias).

    Returns the SE gate broadcast to x.shape, matching SELayer.forward."""
    B, C, H, W = x.shape
    HW = H * W
    x_flat = x.reshape(B, C, HW)
    itemsize = x.dtype.itemsize

    if hw_tile is None:
        hw_tile, hw_padded = _choose_hw_tile(C, HW, itemsize)
    else:
        hw_padded = pl.cdiv(HW, hw_tile) * hw_tile
    if hw_padded != HW:
        # Zero padding keeps the running sum exact; the mean divides by the true HW.
        x_flat = jnp.pad(x_flat, ((0, 0), (0, 0), (0, hw_padded - HW)))
    num_hw_tiles = hw_padded // hw_tile

    w1_t = w1.T                              # (C, Cr)
    w2_t = w2.T                              # (Cr, C)
    Cr = w1_t.shape[1]

    kernel = functools.partial(_se_gate_kernel, inv_hw=1.0 / HW)

    cost = pl.CostEstimate(
        flops=B * C * hw_padded + 4 * B * C * Cr,
        transcendentals=B * C,
        bytes_accessed=(x_flat.size + w1_t.size + w2_t.size + B * C) * itemsize,
    )

    gate = pl.pallas_call(
        kernel,
        out_shape=jax.ShapeDtypeStruct((B, 1, C), x.dtype),
        grid_spec=pltpu.PrefetchScalarGridSpec(
            num_scalar_prefetch=0,
            grid=(B, num_hw_tiles),
            in_specs=[
                pl.BlockSpec((1, C, hw_tile), lambda b, t: (b, 0, t)),
                pl.BlockSpec((C, Cr), lambda b, t: (0, 0)),   # resident weights
                pl.BlockSpec((Cr, C), lambda b, t: (0, 0)),   # resident weights
            ],
            out_specs=pl.BlockSpec((1, 1, C), lambda b, t: (b, 0, 0)),
            scratch_shapes=[pltpu.VMEM((1, C, hw_tile), jnp.float32)],
        ),
        compiler_params=pltpu.CompilerParams(
            dimension_semantics=("parallel", "arbitrary"),
            vmem_limit_bytes=32 * 1024 * 1024,
        ),
        cost_estimate=cost,
    )(x_flat, w1_t, w2_t)

    gate = gate.reshape(B, C)
    # Broadcast lazily OUTSIDE the kernel (matches y.expand_as(x)); the kernel
    # never writes the HW-times-redundant data.
    return jnp.broadcast_to(gate[:, :, None, None], (B, C, H, W))


def _reference(x, w1, w2):
    # Pure-JAX reference mirroring the PyTorch module.
    y = jnp.mean(x, axis=(2, 3))                      # (B, C)
    y = jnp.maximum(y @ w1.T, 0.0)                    # (B, Cr)
    y = jax.nn.sigmoid(y @ w2.T)                      # (B, C)
    return jnp.broadcast_to(y[:, :, None, None], x.shape)


if __name__ == "__main__":
    key = jax.random.PRNGKey(0)
    kx, k1, k2 = jax.random.split(key, 3)

    B, C, H, W = 2, 32, 16, 16
    reduction = 16
    Cr = C // reduction

    x = jax.random.normal(kx, (B, C, H, W), dtype=jnp.float32)
    # Deterministic synthetic weights (PyTorch Linear weight shapes, no bias).
    w1 = jax.random.normal(k1, (Cr, C), dtype=jnp.float32) * 0.1   # Linear(C, C//r)
    w2 = jax.random.normal(k2, (C, Cr), dtype=jnp.float32) * 0.1   # Linear(C//r, C)

    ref = _reference(x, w1, w2)

    # hw_tile=128 forces a multi-tile spatial reduction (grid = (B, 2)) so both
    # the accumulate and finalize phases are exercised at this small shape.
    out = se_layer(x, w1, w2, hw_tile=128)
    jax.block_until_ready(out)
    assert out.shape == x.shape
    assert jnp.allclose(out, ref, atol=1e-5, rtol=1e-5), "mismatch vs reference"

    # Also check the auto-tiled path.
    out_auto = se_layer(x, w1, w2)
    jax.block_until_ready(out_auto)
    assert jnp.allclose(out_auto, ref, atol=1e-5, rtol=1e-5), "mismatch (auto tile)"

    print("KERNEL_OK")
</pallas_src>

<mosaic_0001>
module attributes {stable_mosaic.version = 11 : i64} {
  func.func @_se_gate_kernel(%arg0: i32, %arg1: i32, %arg2: memref<1x32x128xf32, #tpu.memory_space<vmem>>, %arg3: memref<32x2xf32, #tpu.memory_space<vmem>>, %arg4: memref<2x32xf32, #tpu.memory_space<vmem>>, %arg5: memref<1x1x32xf32, #tpu.memory_space<vmem>>, %arg6: memref<1x32x128xf32, #tpu.memory_space<vmem>>) attributes {dimension_semantics = [#tpu.dimension_semantics<parallel>, #tpu.dimension_semantics<arbitrary>], iteration_bounds = array<i64: 2, 2>, scalar_prefetch = 0 : i64, scratch_operands = 1 : i64, tpu.core_type = #tpu.core_type<tc>, window_params = [{transform_indices = @transform_0, window_bounds = array<i64: 1, 32, 128>}, {pipeline_mode = #tpu.pipeline_mode<synchronous>, transform_indices = @transform_1, window_bounds = array<i64: 32, 2>}, {pipeline_mode = #tpu.pipeline_mode<synchronous>, transform_indices = @transform_2, window_bounds = array<i64: 2, 32>}, {transform_indices = @transform_3, window_bounds = array<i64: 1, 1, 32>}]} {
    %c0_i32 = arith.constant 0 : i32
    %0 = arith.cmpi eq, %arg1, %c0_i32 : i32
    %1 = arith.extui %0 : i1 to i32
    %c0_i32_0 = arith.constant 0 : i32
    %2 = arith.cmpi ne, %1, %c0_i32_0 : i32
    scf.if %2 {
      %cst = arith.constant 0.000000e+00 : f32
      %10 = vector.broadcast %cst : f32 to vector<1x32x128xf32>
      %c0_10 = arith.constant 0 : index
      %c0_11 = arith.constant 0 : index
      %c0_12 = arith.constant 0 : index
      %11 = vector.load %arg6[%c0_10, %c0_11, %c0_12] : memref<1x32x128xf32, #tpu.memory_space<vmem>>, vector<1x32x128xf32>
      tpu.vector_store %arg6[%c0_10, %c0_11, %c0_12], %10 {strides = array<i32>} : memref<1x32x128xf32, #tpu.memory_space<vmem>>, vector<1x32x128xf32>,
    } else {
    }
    %c0 = arith.constant 0 : index
    %c0_1 = arith.constant 0 : index
    %c0_2 = arith.constant 0 : index
    %3 = vector.load %arg6[%c0, %c0_1, %c0_2] : memref<1x32x128xf32, #tpu.memory_space<vmem>>, vector<1x32x128xf32>
    %c0_3 = arith.constant 0 : index
    %c0_4 = arith.constant 0 : index
    %c0_5 = arith.constant 0 : index
    %4 = vector.load %arg2[%c0_3, %c0_4, %c0_5] : memref<1x32x128xf32, #tpu.memory_space<vmem>>, vector<1x32x128xf32>
    %5 = arith.addf %3, %4 : vector<1x32x128xf32>
    %c0_6 = arith.constant 0 : index
    %c0_7 = arith.constant 0 : index
    %c0_8 = arith.constant 0 : index
    %6 = vector.load %arg6[%c0_6, %c0_7, %c0_8] : memref<1x32x128xf32, #tpu.memory_space<vmem>>, vector<1x32x128xf32>
    tpu.vector_store %arg6[%c0_6, %c0_7, %c0_8], %5 {strides = array<i32>} : memref<1x32x128xf32, #tpu.memory_space<vmem>>, vector<1x32x128xf32>,
    %c1_i32 = arith.constant 1 : i32
    %7 = arith.cmpi eq, %arg1, %c1_i32 : i32
    %8 = arith.extui %7 : i1 to i32
    %c0_i32_9 = arith.constant 0 : i32
    %9 = arith.cmpi ne, %8, %c0_i32_9 : i32
    scf.if %9 {
      %c0_10 = arith.constant 0 : index
      %c0_11 = arith.constant 0 : index
      %c0_12 = arith.constant 0 : index
      %10 = vector.load %arg6[%c0_10, %c0_11, %c0_12] : memref<1x32x128xf32, #tpu.memory_space<vmem>>, vector<1x32x128xf32>
      %cst = arith.constant dense<0.000000e+00> : vector<1x32xf32>
      %11 = vector.multi_reduction <add>, %10, %cst [2] : vector<1x32x128xf32> to vector<1x32xf32>
      %cst_13 = arith.constant 3.906250e-03 : f32
      %12 = vector.broadcast %cst_13 : f32 to vector<1x32xf32>
      %13 = arith.mulf %11, %12 : vector<1x32xf32>
      %c0_14 = arith.constant 0 : index
      %c0_15 = arith.constant 0 : index
      %14 = vector.load %arg3[%c0_14, %c0_15] : memref<32x2xf32, #tpu.memory_space<vmem>>, vector<32x2xf32>
      %cst_16 = arith.constant dense<0.000000e+00> : vector<1x2xf32>
      %15 = tpu.matmul %13, %14, %cst_16 {dimension_numbers = #tpu.dot_dimension_numbers<[1], [0], [0], [1], [0, 0, 1, 1], [], []>} : vector<1x32xf32>, vector<32x2xf32>, vector<1x2xf32> -> vector<1x2xf32>
      %cst_17 = arith.constant 0.000000e+00 : f32
      %16 = vector.broadcast %cst_17 : f32 to vector<1x2xf32>
      %17 = arith.maximumf %15, %16 : vector<1x2xf32>
      %c0_18 = arith.constant 0 : index
      %c0_19 = arith.constant 0 : index
      %18 = vector.load %arg4[%c0_18, %c0_19] : memref<2x32xf32, #tpu.memory_space<vmem>>, vector<2x32xf32>
      %cst_20 = arith.constant dense<0.000000e+00> : vector<1x32xf32>
      %19 = tpu.matmul %17, %18, %cst_20 {dimension_numbers = #tpu.dot_dimension_numbers<[1], [0], [0], [1], [0, 0, 1, 1], [], []>} : vector<1x2xf32>, vector<2x32xf32>, vector<1x32xf32> -> vector<1x32xf32>
      %20 = arith.negf %19 : vector<1x32xf32>
      %21 = math.exp %20 : vector<1x32xf32>
      %cst_21 = arith.constant 1.000000e+00 : f32
      %22 = vector.broadcast %cst_21 : f32 to vector<1x32xf32>
      %23 = arith.addf %22, %21 : vector<1x32xf32>
      %24 = arith.divf %22, %23 : vector<1x32xf32>
      %25 = vector.shape_cast %24 : vector<1x32xf32> to vector<1x1x32xf32>
      %c0_22 = arith.constant 0 : index
      %c0_23 = arith.constant 0 : index
      %c0_24 = arith.constant 0 : index
      %26 = vector.load %arg5[%c0_22, %c0_23, %c0_24] : memref<1x1x32xf32, #tpu.memory_space<vmem>>, vector<1x1x32xf32>
      tpu.vector_store %arg5[%c0_22, %c0_23, %c0_24], %25 {strides = array<i32>} : memref<1x1x32xf32, #tpu.memory_space<vmem>>, vector<1x1x32xf32>,
    } else {
    }
    return
  }
  func.func @transform_0(%arg0: i32, %arg1: i32) -> (i32, i32, i32) {
    %c0_i32 = arith.constant 0 : i32
    %c0_i32_0 = arith.constant 0 : i32
    return %arg0, %c0_i32, %arg1 : i32, i32, i32
  }
  func.func @transform_1(%arg0: i32, %arg1: i32) -> (i32, i32) {
    %c0_i32 = arith.constant 0 : i32
    %c0_i32_0 = arith.constant 0 : i32
    %c0_i32_1 = arith.constant 0 : i32
    return %c0_i32, %c0_i32_0 : i32, i32
  }
  func.func @transform_2(%arg0: i32, %arg1: i32) -> (i32, i32) {
    %c0_i32 = arith.constant 0 : i32
    %c0_i32_0 = arith.constant 0 : i32
    %c0_i32_1 = arith.constant 0 : i32
    return %c0_i32, %c0_i32_0 : i32, i32
  }
  func.func @transform_3(%arg0: i32, %arg1: i32) -> (i32, i32, i32) {
    %c0_i32 = arith.constant 0 : i32
    %c0_i32_0 = arith.constant 0 : i32
    %c0_i32_1 = arith.constant 0 : i32
    return %arg0, %c0_i32, %c0_i32_0 : i32, i32, i32
  }
}

</mosaic_0001>

<bundles_post_ra>
// kernel: tpu_custom_call.1
= control target key start
LH: loop header
LB: loop body
LE: loop exit
PB: predicated region body
PF: predicated region fallthrough
CT: control target
= control target key end

     0   :  { %8 = vsyncpa [#allocation4], 0  ;;  %s1067_s0 = inlined_call_operand.hbm [shape: f32[2,32,256], index: 0, kind: input, shape index: {}]   ;;  %s1068_s1 = inlined_call_operand.vmem [shape: f32[32,2], index: 1, kind: input, shape index: {}]   ;;  %s1069_s2 = inlined_call_operand.vmem [shape: f32[2,32], index: 2, kind: input, shape index: {}]   ;;  %s1070_s3 = inlined_call_operand.hbm [shape: f32[2,1,32], index: 3, kind: output, shape index: {}]  }
   0x1   :  { %10 = vsyncpa [#allocation4 + $0x1], 0 }
   0x2   :  { %11 = vsyncpa [#allocation5], 0 }
   0x3   :  { %13 = vsyncpa [#allocation5 + $0x1], 0  ;;  %s866_s12 = smov 0   ;;  %s868_s13 = smov 0  }
   0x4   :  { %s870_s14 = smov 0   ;;  %s872_s15 = smov 0  }
   0x5   :  { %s874_s16 = smov 0   ;;  %s876_s17 = smov 0  }
   0x6   :  { %s878_s18 = smov 0   ;;  %s880_s19 = smov 0  }
   0x7   :  { %s882_s20 = smov 0   ;;  %s884_s21 = smov 0  }
   0x8   :  { %s886_s22 = smov 0  }
   0x9 LB: > { %1074 = sst [smem:[#allocation9_spill]] %s816_s17  ;;  %s535_s23 = sadd.s32 4294967295, %s836_s22   ;;  %s836_s22 = sphi %s886_s22, %s19_s22   ;;  %s832_s21 = sphi %s884_s21, %s1095_s21   ;;  %s828_s20 = sphi %s882_s20, %s1094_s20   ;;  %s824_s19 = sphi %s880_s19, %s1093_s19   ;;  %s820_s18 = sphi %s878_s18, %s1092_s18   ;;  %s816_s17 = sphi %s876_s17, %s1084_s17   ;;  %s812_s16 = sphi %s874_s16, %s1091_s16   ;;  %s808_s15 = sphi %s872_s15, %s1090_s15   ;;  %s804_s14 = sphi %s870_s14, %s1089_s14   ;;  %s800_s13 = sphi %s868_s13, %s1088_s13   ;;  %s796_s12 = sphi %s866_s12, %s1087_s12  }
   0xa   : > { %s536_s24 = sadd.s32 4294967294, %s836_s22   ;;  %s28_s25 = sadd.s32 1, %s828_s20 }
   0xb   : > { %s31_s26 = sadd.s32 1, %s832_s21  ;;  %p29_p0 = scmp.ge.s32.totalorder %s28_s25, 2 }
   0xc   : > { %s40_s27 = sadd.s32 1, %s816_s17  ;;  %p47_p1 = scmp.ne.s32.totalorder %s816_s17, %s812_s16 }
   0xd   : > { %p48_p2 = scmp.eq.s32.totalorder %s836_s22, 0  ;;  %s1097_s25 = smov (%p29_p0, %s28_s25), 0 }
   0xe   : > { %1075 = sst [smem:[#allocation10_spill]] %s1097_s25  ;;  %s1099_s26 = smov (!%p29_p0, %s31_s26), %s832_s21 }
   0xf   : > { %s36_s28 = ssub.s32 %s828_s20, %s1097_s25  ;;  %p932_p3 = por %p48_p2, %p47_p1 }
  0x10   : > { %p33_p4 = scmp.ge.s32.totalorder %s1099_s26, 2  ;;  %p53_p5 = scmp.ne.s32.totalorder %s812_s16, %s808_s15 }
  0x11   : > { %p54_p6 = scmp.eq.s32.totalorder %s535_s23, 0  ;;  %s108_s30 = sadd.s32 1, %s804_s14 }
  0x12   : > { %s1101_s26 = smov (%p33_p4, %s1099_s26), 0  ;;  %p118_p8 = scmp.ne.s32.totalorder %s804_s14, %s800_s13 }
  0x13   : > { %1077 = sst [smem:[#allocation11_spill]] %s1101_s26  ;;  %p940_p7 = por %p54_p6, %p53_p5 }
  0x14   : > { %s35_s5 = ssub.s32 %s832_s21, %s1101_s26  ;;  %p119_p9 = scmp.eq.s32.totalorder %s535_s23, 3 }
  0x15   : > { %s37_s6 = sor.u32 %s36_s28, %s35_s5  ;;  %p106_p10 = scmp.eq.s32.totalorder %s35_s5, 0 }
  0x16   : > { %p38_p11 = scmp.eq.s32.totalorder %s37_s6, 0  ;;  %p948_p12 = por %p119_p9, %p118_p8 }
  0x17   : > { %s953_s8 = scalar_select %p106_p10, %s804_s14, %s108_s30  }
  0x18   : > { %s956_s9 = scalar_select %p38_p11, %s816_s17, %s40_s27  }
  0x19   : > { %p124_p13 = scmp.ne.s32.totalorder %s800_s13, %s796_s12  ;;  %p125_p0 = scmp.eq.s32.totalorder %s536_s24, 3 }
  0x1a   : > { %1080 = sst [smem:[#allocation12_spill]] %s956_s9  ;;  %p588_p1 = scmp.lt.s32.totalorder %s836_s22, 4 }
  0x1b   : > { %p961_p2 = por %p125_p0, %p124_p13  ;;  %s151_s11 = sand.u32 1, %s816_s17  }
  0x1c   : > { %s539_s15 = sshll.u32 %s151_s11, 5  ;;  %s540_s23 = sshll.u32 %s832_s21, 3 }
  0x1d   : > { %s160_s28 = sadd.s32 %s828_s20, %s540_s23  ;;  %s155_s5 = scalar_lea.vmem [#allocation3], %s539_s15 }
  0x1e   : > { %s163_s6 = sshll.u32 %s155_s5, 4  ;;  %s541_s26 = sshll.u32 %s160_s28, 7  ;;  %s164_s6 = int_to_ptr.vmem [resolvable:$true] %s163_s6 }
  0x1f   : > { %s162_s27 = scalar_lea.hbm %s1067_s0, %s541_s26  ;;  %p973_p4 = pnand %p588_p1, %p932_p3 }
  0x20   : > { %s152_s9 = scalar_lea.sflag [#allocation4], %s151_s11  ;;  %s701_s17 = scalar_lea.vmem %s164_s6, 512 }
  0x21   : > { %p690_p5 = pneg %p973_p4  ;;  %p702_p6 = scmp.ne.s32.totalorder %s164_s6, %s701_s17 }
  0x22   : > { %s838_s15 = smov [#allocation3]  }
  0x23   : > { %p704_p8 = pnand %p702_p6, %p690_p5  ;;  %s706_s23 = sshll.u32 %s838_s15, 4  ;;  %s707_s23 = int_to_ptr.vmem [resolvable:$false] %s706_s23 }
  0x24   : > { %s708_s28 = scalar_lea.vmem %s707_s23, 1024  ;;  %p709_p10 = scmp.lt.s32.totalorder %s164_s6, %s707_s23 }
  0x25   : > { %p705_p9 = pneg %p704_p8  ;;  %p710_p11 = scmp.lt.s32.totalorder %s708_s28, %s701_s17 }
  0x27   : > { %p711_p13 = por %p710_p11, %p709_p10 }
  0x29   : > { %p712_p0 = pnand %p711_p13, %p705_p9 }
  0x2b   : > { %715 = shalt.err (!%p712_p0)
}
  0x2c   : > { %s839_s25 = smov 256   ;;  %s840_s26 = smov 128  }
  0x2d   : > { %s841_s29 = smov 8   ;;  %p542_p3 = scmp.ge.s32.totalorder %s836_s22, 1 }
  0x2e   : > { %583 = dma.hbm_to_vmem [thread:$0]  (!%p973_p4), %s162_s27, 512, %s164_s6, %s152_s9, %s839_s25, %s840_s26, %s841_s29  }
  0x2f   : > { %p171_p1 = scmp.lt.s32.totalorder %s836_s22, 5 }
  0x31   : > { %p172_p5 = pnand %p542_p3, %p171_p1 }
  0x32   : > { %s177_s11 = sand.u32 (!%p172_p5), 1, %s812_s16  }
  0x33   : > { %175 = sbr.rel (%p172_p5) target bundleno = 676 (0x2a4), region = 32  ;;  %s543_s5 = sshll.u32 (!%p172_p5), %s177_s11, 5 }
  0x34   : > { %s178_s17 = scalar_lea.sflag (!%p172_p5), [#allocation4], %s177_s11  ;;  %s181_s30 = scalar_lea.vmem (!%p172_p5), [#allocation3], %s543_s5 }
  0x38   : > { %787 = dma.done.wait (%p940_p7), %s178_s17, 512  }
  0x39   : > { %789 = vsyncadd (%p940_p7), %s178_s17, 4294966784  ;;  %s201_s15 = sand.u32 1, %s800_s13   ;;  %p544_p4 = scmp.ne.s32.totalorder %s820_s18, 0 }
  0x3a   : > { %s991_s9 = scalar_lea.vmem [#allocation6], %s201_s15 }
  0x3b   : > { %206 = sbr.rel (%p544_p4) target bundleno = 67 (0x43), region = 40 }
  0x40   : > { %v842_v0 = vmov 0.0  }
  0x41   : > { %207 = vst [vmem:[#allocation2 + $0x10] sm:$0xff] %v842_v0  ;;  %208 = vst [vmem:[#allocation2] sm:$0xff] %v842_v0 }
  0x42   : > { %209 = vst [vmem:[#allocation2 + $0x18] sm:$0xff] %v842_v0  ;;  %210 = vst [vmem:[#allocation2 + $0x8] sm:$0xff] %v842_v0 }
  0x43 PF: > { %v215_v2 = vld [vmem:[%s181_s30] sm:$0xff]  ;;  %v216_v5 = vld [vmem:[%s181_s30 + $0x8] sm:$0xff]  ;;  %v217_v7 = vld [vmem:[%s181_s30 + $0x10] sm:$0xff]  ;;  %p545_p7 = scmp.ne.s32.totalorder %s820_s18, 1 }
  0x44   : > { %v218_v11 = vld [vmem:[%s181_s30 + $0x18] sm:$0xff] }
  0x48   : > { %v211_v1 = vld [vmem:[#allocation2 + $0x10] sm:$0xff]  ;;  %v212_v3 = vld [vmem:[#allocation2] sm:$0xff]  ;;  %230 = sbr.rel (%p545_p7) target bundleno = 653 (0x28d), region = 44 }
  0x49   : > { %v219_v4 = vadd.f32 %v215_v2, %v211_v1  ;;  %v213_v6 = vld [vmem:[#allocation2 + $0x18] sm:$0xff]  ;;  %v220_v8 = vadd.f32 %v216_v5, %v212_v3  ;;  %v214_v10 = vld [vmem:[#allocation2 + $0x8] sm:$0xff] }
  0x4a   : > { %v221_v9 = vadd.f32 %v217_v7, %v213_v6  ;;  %v222_v12 = vadd.f32 %v218_v11, %v214_v10 }
  0x4b   : > { %223 = vst [vmem:[#allocation2 + $0x10] sm:$0xff] %v219_v4  ;;  %224 = vst [vmem:[#allocation2] sm:$0xff] %v220_v8 }
  0x4c   : > { %225 = vst [vmem:[#allocation2 + $0x18] sm:$0xff] %v221_v9  ;;  %226 = vst [vmem:[#allocation2 + $0x8] sm:$0xff] %v222_v12 }
  0x4d   : > { %v843_v17 = vmov 0.0   ;;  %v250_v18 = vld [vmem:[%s1068_s1 + $0x18] sm:$0xff]  ;;  %v249_v19 = vld [vmem:[%s1068_s1 + $0x10] sm:$0xff]  ;;  %v248_v20 = vld [vmem:[%s1068_s1 + $0x8] sm:$0xff]  ;;  %vm844_vm0 = vmmov 0   ;;  %v255_v22 = vlaneseq  ;;  %vm266_vm1 = vcmask 130112  }
  0x4e   : > { %560 = vmatprep.subr.mxu0 %v843_v17  ;;  %571 = vmatprep.subr.mxu1 %v843_v17  ;;  %v247_v21 = vld [vmem:[%s1068_s1] sm:$0xff]  ;;  %vm273_vm2 = vcmask 195712   ;;  %vm280_vm3 = vcmask 261312   ;;  %vm282_vm4 = vcmask 261120   ;;  %vm361_vm5 = vcmask 1041408  }
  0x4f   : > { %561 = vmatpush3.msra.mxu0 %v250_v18  ;;  %568 = vmatprep.mubr.msk.f32.mxu0 %vm844_vm0, %v843_v17  ;;  %v256_v23 = vand.u32 127, %v255_v22  ;;  %v258_v24 = vshrl.u32 %v255_v22, 7  ;;  %v356_v47 = vld [vmem:[%s1069_s2] sm:$0x3]  ;;  %vm357_vm6 = vcmask 15360   ;;  %vm441_vm7 = vcmask 253952  }
  0x50   : > { %562 = vmatprep.subr.mxu0 %v843_v17  ;;  %573 = vmatprep.mubr.msk.f32.mxu1 %vm844_vm0, %v843_v17 }
  0x51   : > { %563 = vmatpush3.msra.mxu0 %v249_v19  ;;  %v261_v25 = vadd.s32 4294967288, %v256_v23  ;;  %v275_v26 = vadd.s32 4294967272, %v256_v23  ;;  %v268_v28 = vadd.s32 4294967280, %v256_v23  ;;  %v259_v30 = vsub.s32 %v256_v23, %v258_v24  ;;  %572 = vmatpush3.msk.msra.mxu1 %vm361_vm5, %v356_v47 }
  0x52   : > { %v231_v13 = vld [vmem:[#allocation2 + $0x10] sm:$0xff]  ;;  %v232_v15 = vld [vmem:[#allocation2] sm:$0xff]  ;;  %564 = vmatprep.subr.mxu0 %v843_v17 }
  0x53   : > { %v233_v14 = vld [vmem:[#allocation2 + $0x18] sm:$0xff]  ;;  %235 = vadd.xlane.f32.xlu0 %v231_v13  ;;  %v234_v16 = vld [vmem:[#allocation2 + $0x8] sm:$0xff]  ;;  %565 = vmatpush3.msra.mxu0 %v248_v20  ;;  %v264_v32 = vsub.s32 %v261_v25, %v258_v24  ;;  %v278_v33 = vsub.s32 %v275_v26, %v258_v24  ;;  %v271_v34 = vsub.s32 %v268_v28, %v258_v24 }
  0x54   : > { %239 = vadd.xlane.f32.xlu1 %v233_v14  ;;  %566 = vmatprep.subr.mxu0 %v843_v17 }
  0x55   : > { %567 = vmatpush3.msra.mxu0 %v247_v21 }
  0x57   : > { %237 = vadd.xlane.f32.xlu0 %v232_v15 }
  0x58   : > { %241 = vadd.xlane.f32.xlu1 %v234_v16 }
  0xdc   : > { %v236_v27 = vpop.xlane.xlu0 %235 }
  0xdd   : > { %v240_v29 = vpop.xlane.xlu1 %239  ;;  %v243_v31 = vmul.f32 0.00390625, %v236_v27 }
  0xde   : > { %v245_v35 = vmul.f32 0.00390625, %v240_v29 }
  0xdf   : > { %v260_v40 = vrot.slane %v243_v31, %v259_v30 }
  0xe0   : > { %v238_v36 = vpop.xlane.xlu0 %237  ;;  %v272_v43 = vrot.slane %v245_v35, %v271_v34 }
  0xe1   : > { %v242_v37 = vpop.xlane.xlu1 %241  ;;  %v244_v38 = vmul.f32 0.00390625, %v238_v36 }
  0xe2   : > { %v246_v39 = vmul.f32 0.00390625, %v242_v37 }
  0xe3   : > { %v265_v41 = vrot.slane %v244_v38, %v264_v32 }
  0xe4   : > { %v279_v42 = vrot.slane %v246_v39, %v278_v33 }
  0xe5   : > { %v267_v44 = vsel %vm266_vm1, %v265_v41, %v260_v40 }
  0xe6   : > { %v274_v45 = vsel %vm273_vm2, %v272_v43, %v267_v44 }
  0xe7   : > { %v281_v46 = vsel %vm280_vm3, %v279_v42, %v274_v45 }
  0xe8   : > { %569 = vmatmul.mubr.msk.f32.vlgmr.msra.gmra.mxu0 %vm282_vm4, %v281_v46 }
 0x1a8   : > { %v351_v48 = vpop.f32.mrf.mxu0 }
 0x1a9   : > { %v355_v49 = vmax.f32 %v351_v48, 0.0 }
 0x1aa   : > { %v570_v50 = vpop.f32.mrf.mxu0 }
 0x1ab   : > { %574 = vmatmul.mubr.msk.f32.vlgmr.msra.gmra.mxu1 %vm357_vm6, %v355_v49 }
 0x26b   : > { %v431_v51 = vpop.f32.mrf.mxu1 }
 0x26c   : > { %v549_v52 = vmul.f32 -1.442695, %v431_v51 }
 0x26d   : > { %v575_v53 = vpop.f32.mrf.mxu1 }
 0x26e   : > { %684 = vpow2.f32 %v549_v52 }
 0x27b   : > { %v685_v54 = vpop.eup %684 }
 0x27c   : > { %v438_v55 = vadd.f32 1.0, %v685_v54 }
 0x27e   : > { %686 = vrcp.f32 %v438_v55 }
 0x28b   : > { %v687_v56 = vpop.eup %686 }
 0x28c   : > { %442 = vst.msk [vmem:[%s991_s9] sm:$0x1] %vm441_vm7, %v687_v56 }
 0x28d PF: > { %s550_s11 = sshll.u32 %s824_s19, 4  ;;  %s456_s4 = sshll.u32 %s991_s9, 4  ;;  %s457_s4 = int_to_ptr.vmem [resolvable:$true] %s456_s4 }
 0x28e   : > { %s454_s30 = scalar_lea.hbm %s1070_s3, %s550_s11  ;;  %s444_s6 = scalar_lea.sflag [#allocation5], %s201_s15 }
 0x28f   : > { %s716_s27 = scalar_lea.vmem %s457_s4, 16  ;;  %s845_s18 = smov [#allocation6]  }
 0x290   : > { %p717_p6 = scmp.ne.s32.totalorder %s457_s4, %s716_s27  ;;  %s720_s24 = sshll.u32 %s845_s18, 4  ;;  %s721_s24 = int_to_ptr.vmem [resolvable:$false] %s720_s24 }
 0x291   : > { %s722_s23 = scalar_lea.vmem %s721_s24, 32  ;;  %p723_p10 = scmp.lt.s32.totalorder %s457_s4, %s721_s24 }
 0x292   : > { %p718_p8 = pnand %p717_p6, %p948_p12  ;;  %p724_p11 = scmp.lt.s32.totalorder %s722_s23, %s716_s27 }
 0x294   : > { %p719_p9 = pneg %p718_p8  ;;  %p725_p13 = por %p724_p11, %p723_p10 }
 0x296   : > { %p726_p0 = pnand %p725_p13, %p719_p9 }
 0x298   : > { %729 = shalt.err (!%p726_p0)
}
 0x299   : > { %s730_s19 = scalar_lea.hbm %s454_s30, 16  ;;  %s734_s28 = scalar_lea.hbm %s1070_s3, 32 }
 0x29a   : > { %p731_p3 = scmp.ne.s32.totalorder %s454_s30, %s730_s19  ;;  %p735_p4 = scmp.lt.s32.totalorder %s454_s30, %s1070_s3 }
 0x29b   : > { %p736_p7 = scmp.lt.s32.totalorder %s734_s28, %s730_s19 }
 0x29c   : > { %p732_p1 = pnand %p731_p3, %p948_p12 }
 0x29d   : > { %p737_p6 = por %p736_p7, %p735_p4 }
 0x29e   : > { %p733_p5 = pneg %p732_p1 }
 0x2a0   : > { %p738_p8 = pnand %p737_p6, %p733_p5 }
 0x2a2   : > { %741 = shalt.err (!%p738_p8)
}
 0x2a3   : > { %578 = dma.vmem_to_hbm [thread:$0]  (%p948_p12), %s457_s4, 16, %s454_s30, %s444_s6  }
 0x2a4 PF: > { %p589_p9 = scmp.ge.s32.totalorder %s836_s22, 2  ;;  %s468_s29 = sand.u32 1, %s796_s12  }
 0x2a5   : > { %s469_s11 = scalar_lea.sflag [#allocation5], %s468_s29 }
 0x2a6   : > { %p585_p10 = pnand %p589_p9, %p961_p2 }
 0x2a8   : > { %p586_p11 = pneg %p585_p10 }
 0x2aa   : > { %791 = dma.done.wait (%p586_p11), %s469_s11, 16  }
 0x2ab   : > { %793 = vsyncadd (%p586_p11), %s469_s11, 4294967280  ;;  %s19_s22 = sadd.s32 1, %s836_s22   ;;  %s1083_s7 = sld [smem:[#allocation9_spill]] }
 0x2ac   : > { %p16_p13 = scmp.ge.s32.totalorder %s19_s22, 6   ;;  %s1084_s17 = sld [smem:[#allocation12_spill]] }
 0x2ad   : > { %s1085_s5 = sld [smem:[#allocation10_spill]]  ;;  %s1087_s12 = smov %s800_s13 }
 0x2ae   : > { %s1086_s30 = sld [smem:[#allocation11_spill]]  ;;  %s1088_s13 = smov %s804_s14 }
 0x2af   : > { %s1089_s14 = smov %s953_s8  ;;  %s1090_s15 = smov %s812_s16 }
 0x2b0   : > { %s1092_s18 = smov %s828_s20  ;;  %s1093_s19 = smov %s832_s21 }
 0x2b1   : > { %s1091_s16 = smov %s1083_s7  ;;  %18 = sbr.rel (!%p16_p13) target bundleno = 9 (0x9), region = 85 }
 0x2b3   : > { %s1094_s20 = smov %s1085_s5 }
 0x2b4   : > { %s1095_s21 = smov %s1086_s30 }
 0x2b6   :  { %473 = vsyncpa [#allocation4], 1 }
 0x2b7   :  { %475 = vsyncpa [#allocation4 + $0x1], 1 }
 0x2b8   :  { %476 = vsyncpa [#allocation5], 1 }
 0x2b9   :  { %478 = vsyncpa [#allocation5 + $0x1], 1 }

</bundles_post_ra>
